<compile_context>
chip_gen: v6e
topology: v6e:2x2x1
jax: 0.10.0
libtpu: 0.0.40
codegen_flags: <defaults>
</compile_context>

<pallas_src>
import jax
import jax.numpy as jnp
from jax.experimental import pallas as pl
from jax.experimental.pallas import tpu as pltpu


def simple_cnn_kernel(x_ref, w_ref, bconv_ref, wfc_ref, bfc_ref, out_ref):
    # x_ref:     (TB, L+2, Cin) bf16  -- conv zero-padding already applied along L
    # w_ref:     (3, Cin, Cout) bf16  -- per-tap conv weight, w_ref[k] = w_conv[:, :, k].T
    # bconv_ref: (1, Cout)      f32   -- conv bias
    # wfc_ref:   (Cout, 1)      f32   -- fc weight pre-scaled by 1/L (avg-pool folded in)
    # bfc_ref:   (1, 1)         f32   -- fc bias
    # out_ref:   (1, 1, TB)     f32   -- lane-dense per-batch outputs
    TB, Lp2, Cin = x_ref.shape
    L = Lp2 - 2
    Cout = w_ref.shape[2]

    # Conv1d(kernel_size=3, padding=1): three sublane-shifted windows of the padded input, each a
    # (TB*L, Cin) x (Cin, Cout) bf16 MXU matmul with f32 accumulation.  The reshape only merges the
    # two leading dims (lane axis untouched), so it is layout-preserving rather than a relayout.
    def tap(k):
        xk = x_ref[:, pl.ds(k, L), :].reshape(TB * L, Cin)
        return jnp.dot(xk, w_ref[k], preferred_element_type=jnp.float32)

    y = tap(0) + tap(1) + tap(2)                                        # (TB*L, Cout) f32

    # Conv bias + ReLU on the VPU (f32).  Dropout(0.3) is identity in eval mode.
    # TODO(synk): training-mode dropout (mask + 1/(1-p) scaling) not implemented.
    y = jnp.maximum(y + bconv_ref[...], 0.0)

    # AdaptiveAvgPool1d(1) + Linear(32, 1) fused:
    #   out[b] = sum_{l,o} relu(conv)[b, l, o] * (w_fc[o] / L) + b_fc
    # Lane-axis (Cout) reduction on the idle MXU, then a cheap sublane sum over L.
    p = jnp.dot(y, wfc_ref[...], preferred_element_type=jnp.float32)    # (TB*L, 1)
    pooled = jnp.sum(p.reshape(TB, L, 1), axis=1)                       # (TB, 1)
    res = pooled + bfc_ref[...]                                         # (TB, 1)
    # Relayout the TB per-batch scalars onto the lane axis for a dense, unmasked output store.
    out_ref[...] = res.reshape(1, 1, TB).astype(out_ref.dtype)


def _round_up(x, m):
    return ((x + m - 1) // m) * m


def _pick_batch_tile(B, L, Cin, Cout):
    """Batch-tile size from the TRUE lane/sublane-padded VMEM footprint (review fix)."""
    # bf16 input tile row: Cin pads to 128 lanes, (L+2) pads to 16 sublanes (bf16 packing).
    in_row = _round_up(L + 2, 16) * 128 * 2
    # f32 activation rows (TB*L, Cout): Cout pads to 128 lanes, L pads to 8 sublanes.
    act_row = _round_up(L, 8) * _round_up(Cout, 128) * 4
    # 2x input (double-buffered pipeline) + up to 3 sliced tap copies + ~4 f32 temporaries.
    bytes_per_row = 5 * in_row + 4 * act_row
    budget = 20 << 20            # per-step working set; total stays < 48 MiB even on v7x (64 MiB)
    tb = max(8, budget // bytes_per_row)
    if tb >= B:
        # Whole batch fits in one block; still split in two when B is sizeable so the
        # "parallel" grid axis gives v7x megacore >= 2 steps to shard.
        if B >= 256:
            return min(B, _round_up(pl.cdiv(B, 2), 128))
        return B
    # Multi-block: keep the output lane axis dense (multiple of 128) when the budget allows,
    # otherwise only sublane-align (no forced 128 minimum -> never blows the VMEM budget).
    if tb >= 128:
        return (tb // 128) * 128
    return max(8, (tb // 8) * 8)


def simple_cnn_forward(x, w_conv, b_conv, w_fc, b_fc):
    """x: (B, L, C_in) float32.  Returns (B,) float32, matching SimpleCNN.forward (eval mode)."""
    B, L, Cin = x.shape
    Cout = w_conv.shape[0]                      # 32

    # Conv zero-padding folded in + bf16 streaming cast: ONE fused XLA pass over x,
    # no HBM im2col materialization.
    x_pad = jnp.pad(x, ((0, 0), (1, 1), (0, 0))).astype(jnp.bfloat16)   # (B, L+2, Cin)

    # Tiny constant-shaped weight re-layouts (resident in VMEM for every grid step).
    w_taps = jnp.transpose(w_conv, (2, 1, 0)).astype(jnp.bfloat16)      # (3, Cin, Cout)
    bconv_r = b_conv.reshape(1, Cout).astype(jnp.float32)
    wfc_col = (w_fc.reshape(Cout, 1) / L).astype(jnp.float32)           # fold avg-pool 1/L into fc
    bfc_r = b_fc.reshape(1, 1).astype(jnp.float32)

    tb = _pick_batch_tile(B, L, Cin, Cout)
    nb = pl.cdiv(B, tb)
    Bp = nb * tb
    if Bp != B:
        x_pad = jnp.pad(x_pad, ((0, Bp - B), (0, 0), (0, 0)))

    out = pl.pallas_call(
        simple_cnn_kernel,
        out_shape=jax.ShapeDtypeStruct((nb, 1, tb), jnp.float32),
        grid=(nb,),
        in_specs=[
            pl.BlockSpec((tb, L + 2, Cin), lambda i: (i, 0, 0)),  # padded input tile (bf16 stream)
            pl.BlockSpec((3, Cin, Cout), lambda i: (0, 0, 0)),    # per-tap conv weights (resident)
            pl.BlockSpec((1, Cout), lambda i: (0, 0)),            # conv bias (f32)
            pl.BlockSpec((Cout, 1), lambda i: (0, 0)),            # fc weight / L (f32)
            pl.BlockSpec((1, 1), lambda i: (0, 0)),               # fc bias (f32)
        ],
        out_specs=pl.BlockSpec((1, 1, tb), lambda i: (i, 0, 0)),  # lane-dense output slab
        compiler_params=pltpu.CompilerParams(
            dimension_semantics=("parallel",),     # batch blocks independent -> both TCs on v7x
            vmem_limit_bytes=48 * 1024 * 1024,     # <= v7x 64 MiB physical; ample on v5e/v6e
        ),
    )(x_pad, w_taps, bconv_r, wfc_col, bfc_r)
    return out.reshape(Bp)[:B]


def reference_forward(x, w_conv, b_conv, w_fc, b_fc):
    """Pure-JAX f32 reference mirroring the PyTorch forward (eval mode)."""
    B, L, Cin = x.shape
    x_pad = jnp.pad(x, ((0, 0), (1, 1), (0, 0)))
    y = jnp.zeros((B, L, w_conv.shape[0]), jnp.float32)
    for k in range(3):
        y = y + jnp.einsum('blc,oc->blo', x_pad[:, k:k + L, :], w_conv[:, :, k])
    y = jnp.maximum(y + b_conv[None, None, :], 0.0)
    pooled = jnp.mean(y, axis=1)
    return (pooled @ w_fc.T + b_fc)[:, 0]


if __name__ == "__main__":
    B, L, Cin, Cout = 2, 16, 4, 32

    key = jax.random.PRNGKey(0)
    k1, k2, k3, k4, k5 = jax.random.split(key, 5)

    # Deterministic parameter init (shapes match nn.Conv1d(Cin, 32, 3) / nn.Linear(32, 1)).
    x = jax.random.normal(k1, (B, L, Cin), dtype=jnp.float32)
    w_conv = 0.1 * jax.random.normal(k2, (Cout, Cin, 3), dtype=jnp.float32)
    b_conv = 0.1 * jax.random.normal(k3, (Cout,), dtype=jnp.float32)
    w_fc = 0.1 * jax.random.normal(k4, (1, Cout), dtype=jnp.float32)
    b_fc = 0.1 * jax.random.normal(k5, (1,), dtype=jnp.float32)

    out = simple_cnn_forward(x, w_conv, b_conv, w_fc, b_fc)
    out = jax.block_until_ready(out)

    ref = reference_forward(x, w_conv, b_conv, w_fc, b_fc)
    assert out.shape == (B,)
    # Tolerance reflects the bf16 streaming of x / conv weights (f32 accumulation everywhere).
    assert jnp.allclose(out, ref, atol=1e-2, rtol=1e-2), (out, ref)

    print("KERNEL_OK")
</pallas_src>

<mosaic_0001>
module attributes {stable_mosaic.version = 11 : i64} {
  func.func @simple_cnn_kernel(%arg0: i32, %arg1: memref<2x18x4xbf16, #tpu.memory_space<vmem>>, %arg2: memref<3x4x32xbf16, #tpu.memory_space<vmem>>, %arg3: memref<1x32xf32, #tpu.memory_space<vmem>>, %arg4: memref<32x1xf32, #tpu.memory_space<vmem>>, %arg5: memref<1x1xf32, #tpu.memory_space<vmem>>, %arg6: memref<1x1x2xf32, #tpu.memory_space<vmem>>) attributes {dimension_semantics = [#tpu.dimension_semantics<parallel>], iteration_bounds = array<i64: 1>, scalar_prefetch = 0 : i64, scratch_operands = 0 : i64, tpu.core_type = #tpu.core_type<tc>, window_params = [{transform_indices = @transform_0, window_bounds = array<i64: 2, 18, 4>}, {pipeline_mode = #tpu.pipeline_mode<synchronous>, transform_indices = @transform_1, window_bounds = array<i64: 3, 4, 32>}, {pipeline_mode = #tpu.pipeline_mode<synchronous>, transform_indices = @transform_2, window_bounds = array<i64: 1, 32>}, {pipeline_mode = #tpu.pipeline_mode<synchronous>, transform_indices = @transform_3, window_bounds = array<i64: 32, 1>}, {pipeline_mode = #tpu.pipeline_mode<synchronous>, transform_indices = @transform_4, window_bounds = array<i64: 1, 1>}, {transform_indices = @transform_5, window_bounds = array<i64: 1, 1, 2>}]} {
    %c0 = arith.constant 0 : index
    %c0_0 = arith.constant 0 : index
    %c0_1 = arith.constant 0 : index
    %0 = vector.load %arg1[%c0, %c0_0, %c0_1] : memref<2x18x4xbf16, #tpu.memory_space<vmem>>, vector<2x16x4xbf16>
    %1 = vector.shape_cast %0 : vector<2x16x4xbf16> to vector<32x4xbf16>
    %c0_2 = arith.constant 0 : index
    %c0_3 = arith.constant 0 : index
    %c0_4 = arith.constant 0 : index
    %2 = vector.load %arg2[%c0_2, %c0_3, %c0_4] : memref<3x4x32xbf16, #tpu.memory_space<vmem>>, vector<1x4x32xbf16>
    %3 = vector.shape_cast %2 : vector<1x4x32xbf16> to vector<4x32xbf16>
    %cst = arith.constant dense<0.000000e+00> : vector<32x32xf32>
    %4 = tpu.matmul %1, %3, %cst {dimension_numbers = #tpu.dot_dimension_numbers<[1], [0], [0], [1], [0, 0, 1, 1], [], []>} : vector<32x4xbf16>, vector<4x32xbf16>, vector<32x32xf32> -> vector<32x32xf32>
    %c0_5 = arith.constant 0 : index
    %c1 = arith.constant 1 : index
    %c0_6 = arith.constant 0 : index
    %5 = vector.load %arg1[%c0_5, %c1, %c0_6] : memref<2x18x4xbf16, #tpu.memory_space<vmem>>, vector<2x16x4xbf16>
    %6 = vector.shape_cast %5 : vector<2x16x4xbf16> to vector<32x4xbf16>
    %c1_7 = arith.constant 1 : index
    %c0_8 = arith.constant 0 : index
    %c0_9 = arith.constant 0 : index
    %7 = vector.load %arg2[%c1_7, %c0_8, %c0_9] : memref<3x4x32xbf16, #tpu.memory_space<vmem>>, vector<1x4x32xbf16>
    %8 = vector.shape_cast %7 : vector<1x4x32xbf16> to vector<4x32xbf16>
    %cst_10 = arith.constant dense<0.000000e+00> : vector<32x32xf32>
    %9 = tpu.matmul %6, %8, %cst_10 {dimension_numbers = #tpu.dot_dimension_numbers<[1], [0], [0], [1], [0, 0, 1, 1], [], []>} : vector<32x4xbf16>, vector<4x32xbf16>, vector<32x32xf32> -> vector<32x32xf32>
    %10 = arith.addf %4, %9 : vector<32x32xf32>
    %c0_11 = arith.constant 0 : index
    %c2 = arith.constant 2 : index
    %c0_12 = arith.constant 0 : index
    %11 = vector.load %arg1[%c0_11, %c2, %c0_12] : memref<2x18x4xbf16, #tpu.memory_space<vmem>>, vector<2x16x4xbf16>
    %12 = vector.shape_cast %11 : vector<2x16x4xbf16> to vector<32x4xbf16>
    %c2_13 = arith.constant 2 : index
    %c0_14 = arith.constant 0 : index
    %c0_15 = arith.constant 0 : index
    %13 = vector.load %arg2[%c2_13, %c0_14, %c0_15] : memref<3x4x32xbf16, #tpu.memory_space<vmem>>, vector<1x4x32xbf16>
    %14 = vector.shape_cast %13 : vector<1x4x32xbf16> to vector<4x32xbf16>
    %cst_16 = arith.constant dense<0.000000e+00> : vector<32x32xf32>
    %15 = tpu.matmul %12, %14, %cst_16 {dimension_numbers = #tpu.dot_dimension_numbers<[1], [0], [0], [1], [0, 0, 1, 1], [], []>} : vector<32x4xbf16>, vector<4x32xbf16>, vector<32x32xf32> -> vector<32x32xf32>
    %16 = arith.addf %10, %15 : vector<32x32xf32>
    %c0_17 = arith.constant 0 : index
    %c0_18 = arith.constant 0 : index
    %17 = vector.load %arg3[%c0_17, %c0_18] : memref<1x32xf32, #tpu.memory_space<vmem>>, vector<1x32xf32>
    %18 = vector.broadcast %17 : vector<1x32xf32> to vector<32x32xf32>
    %19 = arith.addf %16, %18 : vector<32x32xf32>
    %cst_19 = arith.constant 0.000000e+00 : f32
    %20 = vector.broadcast %cst_19 : f32 to vector<32x32xf32>
    %21 = arith.maximumf %19, %20 : vector<32x32xf32>
    %c0_20 = arith.constant 0 : index
    %c0_21 = arith.constant 0 : index
    %22 = vector.load %arg4[%c0_20, %c0_21] : memref<32x1xf32, #tpu.memory_space<vmem>>, vector<32x1xf32>
    %cst_22 = arith.constant dense<0.000000e+00> : vector<32x1xf32>
    %23 = tpu.matmul %21, %22, %cst_22 {dimension_numbers = #tpu.dot_dimension_numbers<[1], [0], [0], [1], [0, 0, 1, 1], [], []>} : vector<32x32xf32>, vector<32x1xf32>, vector<32x1xf32> -> vector<32x1xf32>
    %24 = vector.shape_cast %23 : vector<32x1xf32> to vector<2x16x1xf32>
    %cst_23 = arith.constant dense<0.000000e+00> : vector<2x1xf32>
    %25 = vector.multi_reduction <add>, %24, %cst_23 [1] : vector<2x16x1xf32> to vector<2x1xf32>
    %c0_24 = arith.constant 0 : index
    %c0_25 = arith.constant 0 : index
    %26 = vector.load %arg5[%c0_24, %c0_25] : memref<1x1xf32, #tpu.memory_space<vmem>>, vector<1x1xf32>
    %27 = vector.broadcast %26 : vector<1x1xf32> to vector<2x1xf32>
    %28 = arith.addf %25, %27 : vector<2x1xf32>
    %29 = vector.shape_cast %28 : vector<2x1xf32> to vector<1x1x2xf32>
    %c0_26 = arith.constant 0 : index
    %c0_27 = arith.constant 0 : index
    %c0_28 = arith.constant 0 : index
    %30 = vector.load %arg6[%c0_26, %c0_27, %c0_28] : memref<1x1x2xf32, #tpu.memory_space<vmem>>, vector<1x1x2xf32>
    tpu.vector_store %arg6[%c0_26, %c0_27, %c0_28], %29 {strides = array<i32>} : memref<1x1x2xf32, #tpu.memory_space<vmem>>, vector<1x1x2xf32>,
    return
  }
  func.func @transform_0(%arg0: i32) -> (i32, i32, i32) {
    %c0_i32 = arith.constant 0 : i32
    %c0_i32_0 = arith.constant 0 : i32
    %c0_i32_1 = arith.constant 0 : i32
    return %arg0, %c0_i32, %c0_i32_0 : i32, i32, i32
  }
  func.func @transform_1(%arg0: i32) -> (i32, i32, i32) {
    %c0_i32 = arith.constant 0 : i32
    %c0_i32_0 = arith.constant 0 : i32
    %c0_i32_1 = arith.constant 0 : i32
    %c0_i32_2 = arith.constant 0 : i32
    return %c0_i32, %c0_i32_0, %c0_i32_1 : i32, i32, i32
  }
  func.func @transform_2(%arg0: i32) -> (i32, i32) {
    %c0_i32 = arith.constant 0 : i32
    %c0_i32_0 = arith.constant 0 : i32
    %c0_i32_1 = arith.constant 0 : i32
    return %c0_i32, %c0_i32_0 : i32, i32
  }
  func.func @transform_3(%arg0: i32) -> (i32, i32) {
    %c0_i32 = arith.constant 0 : i32
    %c0_i32_0 = arith.constant 0 : i32
    %c0_i32_1 = arith.constant 0 : i32
    return %c0_i32, %c0_i32_0 : i32, i32
  }
  func.func @transform_4(%arg0: i32) -> (i32, i32) {
    %c0_i32 = arith.constant 0 : i32
    %c0_i32_0 = arith.constant 0 : i32
    %c0_i32_1 = arith.constant 0 : i32
    return %c0_i32, %c0_i32_0 : i32, i32
  }
  func.func @transform_5(%arg0: i32) -> (i32, i32, i32) {
    %c0_i32 = arith.constant 0 : i32
    %c0_i32_0 = arith.constant 0 : i32
    %c0_i32_1 = arith.constant 0 : i32
    return %arg0, %c0_i32, %c0_i32_0 : i32, i32, i32
  }
}

</mosaic_0001>

<bundles_post_ra>
// kernel: tpu_custom_call.1
= control target key start
LH: loop header
LB: loop body
LE: loop exit
PB: predicated region body
PF: predicated region fallthrough
CT: control target
= control target key end

     0   :  { %s716_s0 = inlined_call_operand.vmem [shape: bf16[2,18,4], index: 0, kind: input, shape index: {}]   ;;  %s717_s1 = inlined_call_operand.vmem [shape: bf16[3,4,32], index: 1, kind: input, shape index: {}]   ;;  %s718_s2 = inlined_call_operand.vmem [shape: f32[1,32], index: 2, kind: input, shape index: {}]   ;;  %s719_s3 = inlined_call_operand.vmem [shape: f32[32,1], index: 3, kind: input, shape index: {}]   ;;  %s720_s4 = inlined_call_operand.<no memory space> [shape: f32[1,1], index: 4, kind: input, shape index: {}]   ;;  %s721_s5 = inlined_call_operand.hbm [shape: f32[1,1,2], index: 5, kind: output, shape index: {}]  }
   0x1   :  { %v10_v0 = vstv %s720_s4 }
   0x2   :  { %11 = vst [vmem:[#allocation2] sm:$0x1] %v10_v0 }
   0x3   :  { %v487_v1 = vld [vmem:[%s717_s1 + $0x2] sm:$0x3]  ;;  %vm97_vm0 = vcmask 1041408   ;;  %v28_v2 = vld [vmem:[%s717_s1] sm:$0x3]  ;;  %vm90_vm1 = vcmask 31744  }
   0x4   :  { %558 = vmatprep.subr.msk.bf16.mxu0 %vm97_vm0, %v487_v1  ;;  %v99_v3 = vsel %vm97_vm0, %v487_v1, 0  ;;  %559 = vmatprep.subr.msk.bf16.mxu1 %vm97_vm0, %v28_v2  ;;  %v167_v4 = vsel %vm97_vm0, %v28_v2, 0  ;;  %v24_v5 = vld [vmem:[%s716_s0] sm:$0xf]  ;;  %v25_v6 = vld [vmem:[%s716_s0 + $0x4] sm:$0xf] }
   0x5   :  { %527 = vmatpush3.bf16.msra.mxu0 %v99_v3  ;;  %533 = vmatpush3.bf16.msra.mxu1 %v167_v4  ;;  %v642_v7 = vld [vmem:[%s716_s0 + $0x8] sm:$0x1]  ;;  %vm31_vm2 = vsmask.f32 3328  ;;  %vm32_vm3 = vsmask.f32 7440  ;;  %v492_v8 = vcombine.low %v24_v5, %v25_v6 }
   0x6   :  { %v35_v9 = vshrl.u32 %v24_v5, 16  ;;  %v38_v10 = vshll.u32 %v24_v5, 16  ;;  %v44_v11 = vshll.u32 %v25_v6, 16  ;;  %v48_v12 = vshrl.u32 %v25_v6, 16  ;;  %v498_v13 = vld [vmem:[%s717_s1 + $0x4] sm:$0x3] }
   0x7   :  { %v54_v14 = vshll.u32 %v642_v7, 16  ;;  %534 = vmatprep.mubr.msk.bf16.mxu1 %vm90_vm1, %v492_v8  ;;  %560 = vmatprep.subr.msk.bf16.mxu0 %vm97_vm0, %v498_v13  ;;  %v26_v15 = vld [vmem:[%s716_s0 + $0xc] sm:$0xf]  ;;  %v27_v16 = vld [vmem:[%s716_s0 + $0x10] sm:$0xf] }
   0x8   :  { %v37_v17 = vrot.slane %v35_v9, 4  ;;  %v40_v18 = vrot.slane %v38_v10, 5  ;;  %v46_v19 = vrot.slane %v44_v11, 5  ;;  %v50_v20 = vrot.slane %v48_v12, 4  ;;  %v30_v21 = vld [vmem:[%s716_s0 + $0x14] sm:$0x1] }
   0x9   :  { %v56_v22 = vrot.slane %v54_v14, 5  ;;  %v59_v23 = vshrl.u32 %v26_v15, 16  ;;  %v62_v24 = vshll.u32 %v26_v15, 16  ;;  %v68_v25 = vshll.u32 %v27_v16, 16 }
   0xa   :  { %v41_v26 = vor.u32 %v40_v18, %v37_v17  ;;  %v51_v27 = vor.u32 %v50_v20, %v46_v19  ;;  %v72_v28 = vshrl.u32 %v27_v16, 16  ;;  %v78_v29 = vshll.u32 %v30_v21, 16 }
   0xb   :  { %12 = vsyncpa [#allocation4], 0  ;;  %v61_v31 = vrot.slane %v59_v23, 4  ;;  %v64_v32 = vrot.slane %v62_v24, 5  ;;  %v70_v33 = vrot.slane %v68_v25, 5  ;;  %v232_v36 = vrot.slane %v642_v7, 5 }
   0xc   :  { %vm661_vm4 = vmor %vm31_vm2, %vm32_vm3  ;;  %v42_v34 = vrot.slane %v41_v26, 4  ;;  %v52_v35 = vrot.slane %v51_v27, 4  ;;  %v74_v37 = vrot.slane %v72_v28, 4  ;;  %v218_v38 = vld [vmem:[%s716_s0] sm:$0xe]  ;;  %v80_v40 = vrot.slane %v78_v29, 5 }
   0xd   :  { %v65_v39 = vor.u32 %v64_v32, %v61_v31  ;;  %v493_v41 = vcombine.low %v26_v15, %v27_v16  ;;  %vm224_vm5 = vcmask 1042432   ;;  %vm225_vm6 = vcmask 1046532   ;;  %v219_v50 = vld [vmem:[%s716_s0 + $0xc] sm:$0xe]  ;;  %v329_v3 = vld [vmem:[%s719_s3 + $0x18] sm:$0xff]  ;;  %v328_v4 = vld [vmem:[%s719_s3 + $0x10] sm:$0xff] }
   0xe   :  { %v47_v42 = vsel %vm661_vm4, %v42_v34, %v46_v19  ;;  %v57_v43 = vsel %vm661_vm4, %v52_v35, %v56_v22  ;;  %v75_v44 = vor.u32 %v74_v37, %v70_v33  ;;  %vm674_vm7 = vmor %vm224_vm5, %vm225_vm6  ;;  %v496_v48 = vrot.slane %v218_v38, 9  ;;  %544 = vmatprep.subr.mxu1 %v329_v3  ;;  %v327_v5 = vld [vmem:[%s719_s3 + $0x8] sm:$0xff] }
   0xf   :  { %v488_v45 = vcombine.low %v47_v42, %v57_v43  ;;  %v66_v46 = vrot.slane %v65_v39, 4  ;;  %535 = vmatmul.mubr.msk.bf16.vlgmr.msra.gmra.mxu1 %vm90_vm1, %v493_v41  ;;  %v229_v49 = vrot.slane %v25_v6, 5  ;;  %v236_v52 = vrot.slane %v27_v16, 5  ;;  %v326_v6 = vld [vmem:[%s719_s3] sm:$0xff] }
  0x10   :  { %v76_v51 = vrot.slane %v75_v44, 4  ;;  %v239_v57 = vrot.slane %v30_v21, 5  ;;  %v497_v58 = vrot.slane %v219_v50, 9  ;;  %v256_v61 = vsel %vm97_vm0, %v498_v13, 0  ;;  %545 = vmatpush3.msra.mxu1 %v329_v3  ;;  %v503_v21 = vld [vmem:[%s718_s2] ss:$0 sm:$0xff] }
  0x11   :  { %528 = vmatprep.mubr.msk.bf16.mxu0 %vm90_vm1, %v488_v45  ;;  %v71_v53 = vsel %vm661_vm4, %v66_v46, %v70_v33  ;;  %v230_v54 = vsel %vm674_vm7, %v496_v48, %v229_v49  ;;  %v231_v55 = vrot.slane %v229_v49, 4  ;;  %v238_v59 = vrot.slane %v236_v52, 4  ;;  %546 = vmatprep.subr.mxu1 %v328_v4  ;;  %s589_s2 = smov [#allocation3]  }
  0x12   :  { %v81_v56 = vsel %vm661_vm4, %v76_v51, %v80_v40  ;;  %v237_v0 = vsel %vm674_vm7, %v497_v58, %v236_v52  ;;  %547 = vmatpush3.msra.mxu1 %v328_v4  ;;  %vm330_vm8 = vcmask 261120   ;;  %vm428_vm9 = vcmask 7168   ;;  %s479_s3 = sshll.u32 %s589_s2, 4  ;;  %s480_s3 = int_to_ptr.vmem [resolvable:$true] %s479_s3 }
  0x13   :  { %v489_v60 = vcombine.low %v71_v53, %v81_v56  ;;  %v233_v62 = vsel %vm674_vm7, %v231_v55, %v232_v36  ;;  %v240_v1 = vsel %vm674_vm7, %v238_v59, %v239_v57  ;;  %548 = vmatprep.subr.mxu1 %v327_v5  ;;  %v588_v36 = vmov 0   ;;  %v508_v59 = vld [vmem:[#allocation2] ss:$0 sm:$0xff]  ;;  %s566_s4 = scalar_lea.vmem %s480_s3, 16  ;;  %s570_s24 = scalar_lea.vmem %s480_s3, 32 }
  0x14   :  { %v499_v63 = vcombine.low %v230_v54, %v233_v62  ;;  %v500_v2 = vcombine.low %v237_v0, %v240_v1  ;;  %549 = vmatpush3.msra.mxu1 %v327_v5  ;;  %563 = vset.pattern.permute.xlu0 %v588_v36  ;;  %vm459_vm10 = vcmask 1041409   ;;  %v464_v0 = vlaneseq  ;;  %p567_p0 = scmp.ne.s32.totalorder %s480_s3, %s566_s4  ;;  %p571_p1 = scmp.lt.s32.totalorder %s480_s3, %s480_s3 }
  0x15   :  { %529 = vmatmul.mubr.msk.bf16.vlgmr.msra.gmra.mxu0 %vm90_vm1, %v489_v60  ;;  %550 = vmatprep.subr.mxu1 %v326_v6  ;;  %vm471_vm11 = vcmask 8192   ;;  %p572_p2 = scmp.lt.s32.totalorder %s570_s24, %s566_s4 }
  0x16   :  { %539 = vmatpush3.bf16.msra.mxu0 %v256_v61  ;;  %540 = vmatprep.mubr.msk.bf16.mxu0 %vm90_vm1, %v499_v63  ;;  %v465_v1 = vand.u32 127, %v464_v0 }
  0x17   :  { %551 = vmatpush3.msra.mxu1 %v326_v6  ;;  %p573_p3 = por %p572_p2, %p571_p1 }
  0x19   :  { %p574_p4 = pnand %p573_p3, %p567_p0 }
  0x1d   :  { %541 = vmatmul.mubr.msk.bf16.vlgmr.msra.gmra.mxu0 %vm90_vm1, %v500_v2  ;;  %v467_v2 = vshrl.u32 %v464_v0, 7 }
  0x1f   :  { %v468_v3 = vsub.s32 %v465_v1, %v467_v2 }
  0xcf   :  { %v536_v7 = vpop.f32.mrf.mxu1 }
  0xd1   :  { %v203_v10 = vpop.f32.mrf.mxu1 }
  0xd3   :  { %v537_v12 = vpop.f32.mrf.mxu1 }
  0xd5   :  { %v530_v8 = vpop.f32.mrf.mxu0  ;;  %v206_v17 = vpop.f32.mrf.mxu1 }
  0xd6   :  { %v212_v16 = vadd.f32 %v536_v7, %v530_v8 }
  0xd7   :  { %v135_v9 = vpop.f32.mrf.mxu0 }
  0xd8   :  { %v204_v15 = vadd.f32 %v203_v10, %v135_v9 }
  0xd9   :  { %v531_v11 = vpop.f32.mrf.mxu0 }
  0xda   :  { %v215_v23 = vadd.f32 %v537_v12, %v531_v11 }
  0xdb   :  { %v138_v13 = vpop.f32.mrf.mxu0 }
  0xdc   :  { %v207_v24 = vadd.f32 %v206_v17, %v138_v13 }
  0xdd   :  { %v542_v14 = vpop.f32.mrf.mxu0 }
  0xde   :  { %v309_v20 = vadd.f32 %v542_v14, %v212_v16 }
  0xdf   :  { %v292_v18 = vpop.f32.mrf.mxu0 }
  0xe0   :  { %v307_v19 = vadd.f32 %v292_v18, %v204_v15  ;;  %v320_v30 = vadd.f32 %v503_v21, %v309_v20 }
  0xe1   :  { %v543_v22 = vpop.f32.mrf.mxu0 }
  0xe2   :  { %v318_v25 = vadd.f32 %v503_v21, %v307_v19  ;;  %v310_v28 = vadd.f32 %v543_v22, %v215_v23  ;;  %v324_v34 = vmax.f32 %v320_v30, 0.0 }
  0xe3   :  { %v295_v26 = vpop.f32.mrf.mxu0 }
  0xe4   :  { %v322_v27 = vmax.f32 %v318_v25, 0.0  ;;  %v308_v29 = vadd.f32 %v295_v26, %v207_v24  ;;  %v321_v32 = vadd.f32 %v503_v21, %v310_v28 }
  0xe6   :  { %v319_v31 = vadd.f32 %v503_v21, %v308_v29  ;;  %552 = vmatprep.mubr.msk.f32.mxu1 %vm330_vm8, %v322_v27  ;;  %v325_v35 = vmax.f32 %v321_v32, 0.0 }
  0xe8   :  { %v323_v33 = vmax.f32 %v319_v31, 0.0 }
  0xea   :  { %553 = vmatmul.mubr.msk.f32.vlgmr.msra.gmra.mxu1 %vm330_vm8, %v323_v33 }
  0xeb   :  { %555 = vmatprep.mubr.msk.f32.mxu1 %vm330_vm8, %v324_v34 }
  0xee   :  { %556 = vmatmul.mubr.msk.f32.gmra.mxu1 %vm330_vm8, %v325_v35 }
 0x1aa   :  { %v554_v37 = vpop.f32.mrf.mxu1 }
 0x1ab   :  { %v430_v39 = vsel %vm428_vm9, %v554_v37, 0.0 }
 0x1ac   :  { %v409_v38 = vpop.f32.mrf.mxu1 }
 0x1ad   :  { %v429_v40 = vsel %vm428_vm9, %v409_v38, 0.0 }
 0x1ae   :  { %v431_v41 = vadd.f32 %v430_v39, %v429_v40  ;;  %v557_v42 = vpop.f32.mrf.mxu1 }
 0x1af   :  { %v439_v45 = vsel %vm428_vm9, %v557_v42, 0.0 }
 0x1b0   :  { %v432_v43 = vrot.slane %v431_v41, 4  ;;  %v419_v44 = vpop.f32.mrf.mxu1 }
 0x1b1   :  { %v438_v46 = vsel %vm428_vm9, %v419_v44, 0.0 }
 0x1b2   :  { %v433_v47 = vadd.f32 %v432_v43, %v431_v41  ;;  %v440_v48 = vadd.f32 %v439_v45, %v438_v46 }
 0x1b4   :  { %v434_v49 = vrot.slane %v433_v47, 2  ;;  %v441_v50 = vrot.slane %v440_v48, 4 }
 0x1b6   :  { %v435_v51 = vadd.f32 %v434_v49, %v433_v47  ;;  %v442_v52 = vadd.f32 %v441_v50, %v440_v48 }
 0x1b8   :  { %v443_v53 = vrot.slane %v442_v52, 2  ;;  %v436_v54 = vrot.slane %v435_v51, 1 }
 0x1ba   :  { %v444_v55 = vadd.f32 %v443_v53, %v442_v52  ;;  %v437_v57 = vadd.f32 %v436_v54, %v435_v51 }
 0x1bc   :  { %v445_v56 = vrot.slane %v444_v55, 1  ;;  %v454_v61 = vadd.f32 %v508_v59, %v437_v57 }
 0x1be   :  { %v446_v58 = vadd.f32 %v445_v56, %v444_v55 }
 0x1c0   :  { %v455_v60 = vadd.f32 %v508_v59, %v446_v58 }
 0x1c2   :  { %v458_v62 = vrot.slane %v455_v60, 7 }
 0x1c4   :  { %v460_v63 = vsel %vm459_vm10, %v458_v62, %v454_v61 }
 0x1c5   :  { %462 = vperm.xlu0 %563, %v460_v63  }
 0x240   :  { %v463_v4 = vpop.permute.xlu0 %462 }
 0x241   :  { %v469_v5 = vrot.slane %v463_v4, %v468_v3 }
 0x243   :  { %472 = vst.msk [vmem:[#allocation3] sm:$0x1] %vm471_vm11, %v469_v5 }
 0x244   :  { %577 = shalt.err (!%p574_p4)
}
 0x245   :  { %482 = dma.vmem_to_hbm [thread:$0]  %s480_s3, 16, %s721_s5, [#allocation4]  }
 0x246   :  { %586 = dma.done.wait [#allocation4], 16  }
 0x247   :  { %587 = vsyncadd [#allocation4], 4294967280 }
 0x248   :  { %486 = vsyncpa [#allocation4], 1 }

</bundles_post_ra>
